<compile_context>
chip_gen: v5e
topology: v5e:2x2
jax: 0.10.0
libtpu: 0.0.40
codegen_flags: <defaults>
</compile_context>

<pallas_src>
import functools

import jax
import jax.numpy as jnp
from jax.experimental import pallas as pl
from jax.experimental.pallas import tpu as pltpu


def _fusion_kernel(x_ref, w1_ref, b1_ref, w23_ref, b23_ref, o_ref, *, compute_dtype):
    """Fused MLP: Linear(M->H) -> ReLU -> (Dropout=id) -> Linear(H->1).

    x_ref   : (M, TR, LW) VMEM  -- batch dense on (sublane, lane), feature-major.
    w1_ref  : (M, H)      SMEM  -- layer-1 weight, (in, out) layout.
    b1_ref  : (H,)        SMEM
    w23_ref : (H,)        SMEM  -- folded (w2 @ w3).
    b23_ref : (1,)        SMEM  -- folded (b2 @ w3 + b3).
    o_ref   : (TR, LW)    VMEM
    """
    num_models = x_ref.shape[0]
    hidden = b1_ref.shape[0]
    tr, lw = o_ref.shape

    # 8-row sublane strips keep the live set in vregs (3 feats + h + acc ~= 20 vregs
    # at LW=512); one full (strip, LW) store per strip.
    strip = 8 if (tr % 8 == 0 and tr >= 8) else tr
    n_strips = tr // strip

    def do_strip(r0):
        feats = [x_ref[i, pl.ds(r0, strip), :].astype(compute_dtype)
                 for i in range(num_models)]
        # Single broadcast init with the folded output bias (accumulate in f32).
        acc = jnp.full((strip, lw), b23_ref[0], jnp.float32)
        for j in range(hidden):
            # Fold b1[j] into the first multiply-add of the hidden unit.
            h = feats[0] * w1_ref[0, j].astype(compute_dtype) \
                + b1_ref[j].astype(compute_dtype)
            for i in range(1, num_models):
                h = h + feats[i] * w1_ref[i, j].astype(compute_dtype)
            h = jnp.maximum(h, 0.0)
            # Dropout(0.2) is identity at inference time.
            # TODO(synk): training-mode dropout would need pltpu.prng_seed +
            # pltpu.prng_random_bits masking and a 1/(1-p) rescale.
            acc = acc + (h * w23_ref[j].astype(compute_dtype)).astype(jnp.float32)
        o_ref[pl.ds(r0, strip), :] = acc.astype(o_ref.dtype)

    if n_strips == 1:
        do_strip(0)
    else:
        def body(s, carry):
            do_strip(pl.multiple_of(s * strip, strip))
            return carry
        jax.lax.fori_loop(0, n_strips, body, 0, unroll=True)


def _plan_tiles(batch, lanes, max_rows_per_tile):
    """Pick (rows, rows_padded, tile_rows) for the (rows, lanes) batch slab."""
    rows = pl.cdiv(batch, lanes)
    if rows < 16:
        # Too small to split into >=2 tiles at 8-row granularity: one tile,
        # block dim == full dim (legal even if < 8).
        return rows, rows, rows
    # At least 2 "parallel" tiles (keeps both v7x TensorCores busy), capped at
    # max_rows_per_tile, rounded to a multiple of 8 (sublane granularity).
    half = pl.cdiv(rows, 2)
    half8 = pl.cdiv(half, 8) * 8
    tile_rows = min(max_rows_per_tile, half8)
    rows_padded = pl.cdiv(rows, tile_rows) * tile_rows
    return rows, rows_padded, tile_rows


def fusion_forward_feature_major(x_fm, params, *, lanes=512, max_rows_per_tile=256,
                                 compute_dtype=jnp.float32, out_dtype=jnp.float32):
    """x_fm: (num_models, B), feature-major (producer layout; no transpose pass).

    params: (in, out)-layout weights (== PyTorch weight.T), (1, out) biases.
    x_fm may be f32 or bf16 (kernel casts to compute_dtype).
    Returns (B, 1) in out_dtype.
    """
    M, B = x_fm.shape
    H = params["w1"].shape[1]

    hi = jax.lax.Precision.HIGHEST
    # Exact algebraic fold of Linear(8->4) o Linear(4->1) into Linear(8->1).
    w23 = jnp.dot(params["w2"], params["w3"], precision=hi).reshape(H)      # (H,)
    b23 = (jnp.dot(params["b2"], params["w3"], precision=hi)
           + params["b3"]).reshape(1)                                       # (1,)
    w1 = params["w1"]                                                       # (M, H)
    b1 = params["b1"].reshape(H)                                            # (H,)

    rows, rows_padded, tile_rows = _plan_tiles(B, lanes, max_rows_per_tile)
    b_padded = rows_padded * lanes
    if b_padded != B:
        x_fm = jnp.pad(x_fm, ((0, 0), (0, b_padded - B)))
    x3 = x_fm.reshape(M, rows_padded, lanes)                                # free reshape

    grid = (rows_padded // tile_rows,)
    kernel = functools.partial(_fusion_kernel, compute_dtype=compute_dtype)
    # (3, 256, 512) + (256, 512) f32 tile ~= 2 MiB/step; double-buffered ~4 MiB,
    # well under v7x's 32 MiB scoped VMEM.  (On v5e, pipeline_mode=pl.Buffered(3)
    # on the x spec can hide DMA jitter for a few extra percent.)
    out2d = pl.pallas_call(
        kernel,
        out_shape=jax.ShapeDtypeStruct((rows_padded, lanes), out_dtype),
        grid=grid,
        in_specs=[
            pl.BlockSpec((M, tile_rows, lanes), lambda i: (0, i, 0)),        # x (pipelined)
            pl.BlockSpec(memory_space=pltpu.MemorySpace.SMEM),               # w1
            pl.BlockSpec(memory_space=pltpu.MemorySpace.SMEM),               # b1
            pl.BlockSpec(memory_space=pltpu.MemorySpace.SMEM),               # w23
            pl.BlockSpec(memory_space=pltpu.MemorySpace.SMEM),               # b23
        ],
        out_specs=pl.BlockSpec((tile_rows, lanes), lambda i: (i, 0)),
        compiler_params=pltpu.CompilerParams(dimension_semantics=("parallel",)),
    )(x3, w1, b1, w23, b23)

    return out2d.reshape(b_padded)[:B].reshape(B, 1)


def fusion_forward(x, params, **kwargs):
    """PyTorch-layout entry point: x is (B, num_models).

    The transpose to feature-major is one extra HBM pass; producers that can emit
    (num_models, B) directly should call fusion_forward_feature_major instead.
    """
    # TODO(synk): fuse this transpose into the upstream producer / dataloader.
    return fusion_forward_feature_major(x.T, params, **kwargs)


def init_params(key, num_models=3):
    """Deterministic synthetic init; weights stored as (in, out) == PyTorch weight.T."""
    k1, k2, k3, k4, k5, k6 = jax.random.split(key, 6)
    w1 = jax.random.normal(k1, (num_models, 8), jnp.float32) * 0.5
    b1 = jax.random.normal(k2, (1, 8), jnp.float32) * 0.1
    w2 = jax.random.normal(k3, (8, 4), jnp.float32) * 0.5
    b2 = jax.random.normal(k4, (1, 4), jnp.float32) * 0.1
    w3 = jax.random.normal(k5, (4, 1), jnp.float32) * 0.5
    b3 = jax.random.normal(k6, (1, 1), jnp.float32) * 0.1
    return dict(w1=w1, b1=b1, w2=w2, b2=b2, w3=w3, b3=b3)


def reference_forward(x, p):
    hi = jax.lax.Precision.HIGHEST
    h1 = jnp.maximum(jnp.dot(x, p["w1"], precision=hi) + p["b1"], 0.0)
    h2 = jnp.dot(h1, p["w2"], precision=hi) + p["b2"]
    return jnp.dot(h2, p["w3"], precision=hi) + p["b3"]


if __name__ == "__main__":
    key = jax.random.PRNGKey(0)
    kx, kb, kp = jax.random.split(key, 3)

    num_models = 3
    params = init_params(kp, num_models)

    # 1) Small batch: single-tile path (rows < 16), PyTorch (B, M) API.
    batch = 8
    x = jax.random.normal(kx, (batch, num_models), jnp.float32)
    out = jax.block_until_ready(fusion_forward(x, params))
    ref = reference_forward(x, params)
    assert out.shape == (batch, 1), out.shape
    assert jnp.allclose(out, ref, atol=1e-4, rtol=1e-4), "small-batch mismatch"

    # 2) Medium batch, feature-major input (no wrapper transpose+pad pass on the
    #    kernel side), >= 2 "parallel" grid tiles + 8-row strip loop + padding.
    big = 8 * 1024 + 37          # not a multiple of lanes -> exercises padding path
    xb = jax.random.normal(kb, (big, num_models), jnp.float32)
    xb_fm = xb.T                 # producer-side feature-major layout
    outb = jax.block_until_ready(fusion_forward_feature_major(xb_fm, params))
    refb = reference_forward(xb, params)
    assert outb.shape == (big, 1), outb.shape
    assert jnp.allclose(outb, refb, atol=1e-4, rtol=1e-4), "big-batch mismatch"

    # 3) bf16 VALU lever (v6e/v7x) + bf16 output (v5e bandwidth lever): f32 accumulate,
    #    relaxed tolerance as flagged in the review.
    outc = jax.block_until_ready(
        fusion_forward_feature_major(xb_fm, params,
                                     compute_dtype=jnp.bfloat16,
                                     out_dtype=jnp.bfloat16))
    assert outc.shape == (big, 1), outc.shape
    assert jnp.allclose(outc.astype(jnp.float32), refb, atol=1.5e-1, rtol=5e-2), \
        "bf16-path mismatch"

    print("KERNEL_OK")
</pallas_src>

<mosaic_0001>
module attributes {stable_mosaic.version = 11 : i64} {
  func.func @_fusion_kernel(%arg0: i32, %arg1: memref<3x1x512xf32, #tpu.memory_space<vmem>>, %arg2: memref<3x8xf32, #tpu.memory_space<smem>>, %arg3: memref<8xf32, #tpu.memory_space<smem>>, %arg4: memref<8xf32, #tpu.memory_space<smem>>, %arg5: memref<1xf32, #tpu.memory_space<smem>>, %arg6: memref<1x512xf32, #tpu.memory_space<vmem>>) attributes {dimension_semantics = [#tpu.dimension_semantics<parallel>], iteration_bounds = array<i64: 1>, scalar_prefetch = 0 : i64, scratch_operands = 0 : i64, tpu.core_type = #tpu.core_type<tc>, window_params = [{transform_indices = @transform_0, window_bounds = array<i64: 3, 1, 512>}, {transform_indices = @transform_1, window_bounds = array<i64: 3, 8>}, {transform_indices = @transform_2, window_bounds = array<i64: 8>}, {transform_indices = @transform_3, window_bounds = array<i64: 8>}, {transform_indices = @transform_4, window_bounds = array<i64: 1>}, {transform_indices = @transform_5, window_bounds = array<i64: 1, 512>}]} {
    %c0 = arith.constant 0 : index
    %c0_0 = arith.constant 0 : index
    %c0_1 = arith.constant 0 : index
    %0 = vector.load %arg1[%c0, %c0_0, %c0_1] : memref<3x1x512xf32, #tpu.memory_space<vmem>>, vector<1x1x512xf32>
    %1 = vector.shape_cast %0 : vector<1x1x512xf32> to vector<1x512xf32>
    %c1 = arith.constant 1 : index
    %c0_2 = arith.constant 0 : index
    %c0_3 = arith.constant 0 : index
    %2 = vector.load %arg1[%c1, %c0_2, %c0_3] : memref<3x1x512xf32, #tpu.memory_space<vmem>>, vector<1x1x512xf32>
    %3 = vector.shape_cast %2 : vector<1x1x512xf32> to vector<1x512xf32>
    %c2 = arith.constant 2 : index
    %c0_4 = arith.constant 0 : index
    %c0_5 = arith.constant 0 : index
    %4 = vector.load %arg1[%c2, %c0_4, %c0_5] : memref<3x1x512xf32, #tpu.memory_space<vmem>>, vector<1x1x512xf32>
    %5 = vector.shape_cast %4 : vector<1x1x512xf32> to vector<1x512xf32>
    %c0_6 = arith.constant 0 : index
    %6 = memref.load %arg5[%c0_6] : memref<1xf32, #tpu.memory_space<smem>>
    %7 = vector.broadcast %6 : f32 to vector<1x512xf32>
    %c0_7 = arith.constant 0 : index
    %c0_8 = arith.constant 0 : index
    %8 = memref.load %arg2[%c0_7, %c0_8] : memref<3x8xf32, #tpu.memory_space<smem>>
    %9 = vector.broadcast %8 : f32 to vector<1x512xf32>
    %10 = arith.mulf %1, %9 : vector<1x512xf32>
    %c0_9 = arith.constant 0 : index
    %11 = memref.load %arg3[%c0_9] : memref<8xf32, #tpu.memory_space<smem>>
    %12 = vector.broadcast %11 : f32 to vector<1x512xf32>
    %13 = arith.addf %10, %12 : vector<1x512xf32>
    %c1_10 = arith.constant 1 : index
    %c0_11 = arith.constant 0 : index
    %14 = memref.load %arg2[%c1_10, %c0_11] : memref<3x8xf32, #tpu.memory_space<smem>>
    %15 = vector.broadcast %14 : f32 to vector<1x512xf32>
    %16 = arith.mulf %3, %15 : vector<1x512xf32>
    %17 = arith.addf %13, %16 : vector<1x512xf32>
    %c2_12 = arith.constant 2 : index
    %c0_13 = arith.constant 0 : index
    %18 = memref.load %arg2[%c2_12, %c0_13] : memref<3x8xf32, #tpu.memory_space<smem>>
    %19 = vector.broadcast %18 : f32 to vector<1x512xf32>
    %20 = arith.mulf %5, %19 : vector<1x512xf32>
    %21 = arith.addf %17, %20 : vector<1x512xf32>
    %cst = arith.constant 0.000000e+00 : f32
    %22 = vector.broadcast %cst : f32 to vector<1x512xf32>
    %23 = arith.maximumf %21, %22 : vector<1x512xf32>
    %c0_14 = arith.constant 0 : index
    %24 = memref.load %arg4[%c0_14] : memref<8xf32, #tpu.memory_space<smem>>
    %25 = vector.broadcast %24 : f32 to vector<1x512xf32>
    %26 = arith.mulf %23, %25 : vector<1x512xf32>
    %27 = arith.addf %7, %26 : vector<1x512xf32>
    %c0_15 = arith.constant 0 : index
    %c1_16 = arith.constant 1 : index
    %28 = memref.load %arg2[%c0_15, %c1_16] : memref<3x8xf32, #tpu.memory_space<smem>>
    %29 = vector.broadcast %28 : f32 to vector<1x512xf32>
    %30 = arith.mulf %1, %29 : vector<1x512xf32>
    %c1_17 = arith.constant 1 : index
    %31 = memref.load %arg3[%c1_17] : memref<8xf32, #tpu.memory_space<smem>>
    %32 = vector.broadcast %31 : f32 to vector<1x512xf32>
    %33 = arith.addf %30, %32 : vector<1x512xf32>
    %c1_18 = arith.constant 1 : index
    %c1_19 = arith.constant 1 : index
    %34 = memref.load %arg2[%c1_18, %c1_19] : memref<3x8xf32, #tpu.memory_space<smem>>
    %35 = vector.broadcast %34 : f32 to vector<1x512xf32>
    %36 = arith.mulf %3, %35 : vector<1x512xf32>
    %37 = arith.addf %33, %36 : vector<1x512xf32>
    %c2_20 = arith.constant 2 : index
    %c1_21 = arith.constant 1 : index
    %38 = memref.load %arg2[%c2_20, %c1_21] : memref<3x8xf32, #tpu.memory_space<smem>>
    %39 = vector.broadcast %38 : f32 to vector<1x512xf32>
    %40 = arith.mulf %5, %39 : vector<1x512xf32>
    %41 = arith.addf %37, %40 : vector<1x512xf32>
    %cst_22 = arith.constant 0.000000e+00 : f32
    %42 = vector.broadcast %cst_22 : f32 to vector<1x512xf32>
    %43 = arith.maximumf %41, %42 : vector<1x512xf32>
    %c1_23 = arith.constant 1 : index
    %44 = memref.load %arg4[%c1_23] : memref<8xf32, #tpu.memory_space<smem>>
    %45 = vector.broadcast %44 : f32 to vector<1x512xf32>
    %46 = arith.mulf %43, %45 : vector<1x512xf32>
    %47 = arith.addf %27, %46 : vector<1x512xf32>
    %c0_24 = arith.constant 0 : index
    %c2_25 = arith.constant 2 : index
    %48 = memref.load %arg2[%c0_24, %c2_25] : memref<3x8xf32, #tpu.memory_space<smem>>
    %49 = vector.broadcast %48 : f32 to vector<1x512xf32>
    %50 = arith.mulf %1, %49 : vector<1x512xf32>
    %c2_26 = arith.constant 2 : index
    %51 = memref.load %arg3[%c2_26] : memref<8xf32, #tpu.memory_space<smem>>
    %52 = vector.broadcast %51 : f32 to vector<1x512xf32>
    %53 = arith.addf %50, %52 : vector<1x512xf32>
    %c1_27 = arith.constant 1 : index
    %c2_28 = arith.constant 2 : index
    %54 = memref.load %arg2[%c1_27, %c2_28] : memref<3x8xf32, #tpu.memory_space<smem>>
    %55 = vector.broadcast %54 : f32 to vector<1x512xf32>
    %56 = arith.mulf %3, %55 : vector<1x512xf32>
    %57 = arith.addf %53, %56 : vector<1x512xf32>
    %c2_29 = arith.constant 2 : index
    %c2_30 = arith.constant 2 : index
    %58 = memref.load %arg2[%c2_29, %c2_30] : memref<3x8xf32, #tpu.memory_space<smem>>
    %59 = vector.broadcast %58 : f32 to vector<1x512xf32>
    %60 = arith.mulf %5, %59 : vector<1x512xf32>
    %61 = arith.addf %57, %60 : vector<1x512xf32>
    %cst_31 = arith.constant 0.000000e+00 : f32
    %62 = vector.broadcast %cst_31 : f32 to vector<1x512xf32>
    %63 = arith.maximumf %61, %62 : vector<1x512xf32>
    %c2_32 = arith.constant 2 : index
    %64 = memref.load %arg4[%c2_32] : memref<8xf32, #tpu.memory_space<smem>>
    %65 = vector.broadcast %64 : f32 to vector<1x512xf32>
    %66 = arith.mulf %63, %65 : vector<1x512xf32>
    %67 = arith.addf %47, %66 : vector<1x512xf32>
    %c0_33 = arith.constant 0 : index
    %c3 = arith.constant 3 : index
    %68 = memref.load %arg2[%c0_33, %c3] : memref<3x8xf32, #tpu.memory_space<smem>>
    %69 = vector.broadcast %68 : f32 to vector<1x512xf32>
    %70 = arith.mulf %1, %69 : vector<1x512xf32>
    %c3_34 = arith.constant 3 : index
    %71 = memref.load %arg3[%c3_34] : memref<8xf32, #tpu.memory_space<smem>>
    %72 = vector.broadcast %71 : f32 to vector<1x512xf32>
    %73 = arith.addf %70, %72 : vector<1x512xf32>
    %c1_35 = arith.constant 1 : index
    %c3_36 = arith.constant 3 : index
    %74 = memref.load %arg2[%c1_35, %c3_36] : memref<3x8xf32, #tpu.memory_space<smem>>
    %75 = vector.broadcast %74 : f32 to vector<1x512xf32>
    %76 = arith.mulf %3, %75 : vector<1x512xf32>
    %77 = arith.addf %73, %76 : vector<1x512xf32>
    %c2_37 = arith.constant 2 : index
    %c3_38 = arith.constant 3 : index
    %78 = memref.load %arg2[%c2_37, %c3_38] : memref<3x8xf32, #tpu.memory_space<smem>>
    %79 = vector.broadcast %78 : f32 to vector<1x512xf32>
    %80 = arith.mulf %5, %79 : vector<1x512xf32>
    %81 = arith.addf %77, %80 : vector<1x512xf32>
    %cst_39 = arith.constant 0.000000e+00 : f32
    %82 = vector.broadcast %cst_39 : f32 to vector<1x512xf32>
    %83 = arith.maximumf %81, %82 : vector<1x512xf32>
    %c3_40 = arith.constant 3 : index
    %84 = memref.load %arg4[%c3_40] : memref<8xf32, #tpu.memory_space<smem>>
    %85 = vector.broadcast %84 : f32 to vector<1x512xf32>
    %86 = arith.mulf %83, %85 : vector<1x512xf32>
    %87 = arith.addf %67, %86 : vector<1x512xf32>
    %c0_41 = arith.constant 0 : index
    %c4 = arith.constant 4 : index
    %88 = memref.load %arg2[%c0_41, %c4] : memref<3x8xf32, #tpu.memory_space<smem>>
    %89 = vector.broadcast %88 : f32 to vector<1x512xf32>
    %90 = arith.mulf %1, %89 : vector<1x512xf32>
    %c4_42 = arith.constant 4 : index
    %91 = memref.load %arg3[%c4_42] : memref<8xf32, #tpu.memory_space<smem>>
    %92 = vector.broadcast %91 : f32 to vector<1x512xf32>
    %93 = arith.addf %90, %92 : vector<1x512xf32>
    %c1_43 = arith.constant 1 : index
    %c4_44 = arith.constant 4 : index
    %94 = memref.load %arg2[%c1_43, %c4_44] : memref<3x8xf32, #tpu.memory_space<smem>>
    %95 = vector.broadcast %94 : f32 to vector<1x512xf32>
    %96 = arith.mulf %3, %95 : vector<1x512xf32>
    %97 = arith.addf %93, %96 : vector<1x512xf32>
    %c2_45 = arith.constant 2 : index
    %c4_46 = arith.constant 4 : index
    %98 = memref.load %arg2[%c2_45, %c4_46] : memref<3x8xf32, #tpu.memory_space<smem>>
    %99 = vector.broadcast %98 : f32 to vector<1x512xf32>
    %100 = arith.mulf %5, %99 : vector<1x512xf32>
    %101 = arith.addf %97, %100 : vector<1x512xf32>
    %cst_47 = arith.constant 0.000000e+00 : f32
    %102 = vector.broadcast %cst_47 : f32 to vector<1x512xf32>
    %103 = arith.maximumf %101, %102 : vector<1x512xf32>
    %c4_48 = arith.constant 4 : index
    %104 = memref.load %arg4[%c4_48] : memref<8xf32, #tpu.memory_space<smem>>
    %105 = vector.broadcast %104 : f32 to vector<1x512xf32>
    %106 = arith.mulf %103, %105 : vector<1x512xf32>
    %107 = arith.addf %87, %106 : vector<1x512xf32>
    %c0_49 = arith.constant 0 : index
    %c5 = arith.constant 5 : index
    %108 = memref.load %arg2[%c0_49, %c5] : memref<3x8xf32, #tpu.memory_space<smem>>
    %109 = vector.broadcast %108 : f32 to vector<1x512xf32>
    %110 = arith.mulf %1, %109 : vector<1x512xf32>
    %c5_50 = arith.constant 5 : index
    %111 = memref.load %arg3[%c5_50] : memref<8xf32, #tpu.memory_space<smem>>
    %112 = vector.broadcast %111 : f32 to vector<1x512xf32>
    %113 = arith.addf %110, %112 : vector<1x512xf32>
    %c1_51 = arith.constant 1 : index
    %c5_52 = arith.constant 5 : index
    %114 = memref.load %arg2[%c1_51, %c5_52] : memref<3x8xf32, #tpu.memory_space<smem>>
    %115 = vector.broadcast %114 : f32 to vector<1x512xf32>
    %116 = arith.mulf %3, %115 : vector<1x512xf32>
    %117 = arith.addf %113, %116 : vector<1x512xf32>
    %c2_53 = arith.constant 2 : index
    %c5_54 = arith.constant 5 : index
    %118 = memref.load %arg2[%c2_53, %c5_54] : memref<3x8xf32, #tpu.memory_space<smem>>
    %119 = vector.broadcast %118 : f32 to vector<1x512xf32>
    %120 = arith.mulf %5, %119 : vector<1x512xf32>
    %121 = arith.addf %117, %120 : vector<1x512xf32>
    %cst_55 = arith.constant 0.000000e+00 : f32
    %122 = vector.broadcast %cst_55 : f32 to vector<1x512xf32>
    %123 = arith.maximumf %121, %122 : vector<1x512xf32>
    %c5_56 = arith.constant 5 : index
    %124 = memref.load %arg4[%c5_56] : memref<8xf32, #tpu.memory_space<smem>>
    %125 = vector.broadcast %124 : f32 to vector<1x512xf32>
    %126 = arith.mulf %123, %125 : vector<1x512xf32>
    %127 = arith.addf %107, %126 : vector<1x512xf32>
    %c0_57 = arith.constant 0 : index
    %c6 = arith.constant 6 : index
    %128 = memref.load %arg2[%c0_57, %c6] : memref<3x8xf32, #tpu.memory_space<smem>>
    %129 = vector.broadcast %128 : f32 to vector<1x512xf32>
    %130 = arith.mulf %1, %129 : vector<1x512xf32>
    %c6_58 = arith.constant 6 : index
    %131 = memref.load %arg3[%c6_58] : memref<8xf32, #tpu.memory_space<smem>>
    %132 = vector.broadcast %131 : f32 to vector<1x512xf32>
    %133 = arith.addf %130, %132 : vector<1x512xf32>
    %c1_59 = arith.constant 1 : index
    %c6_60 = arith.constant 6 : index
    %134 = memref.load %arg2[%c1_59, %c6_60] : memref<3x8xf32, #tpu.memory_space<smem>>
    %135 = vector.broadcast %134 : f32 to vector<1x512xf32>
    %136 = arith.mulf %3, %135 : vector<1x512xf32>
    %137 = arith.addf %133, %136 : vector<1x512xf32>
    %c2_61 = arith.constant 2 : index
    %c6_62 = arith.constant 6 : index
    %138 = memref.load %arg2[%c2_61, %c6_62] : memref<3x8xf32, #tpu.memory_space<smem>>
    %139 = vector.broadcast %138 : f32 to vector<1x512xf32>
    %140 = arith.mulf %5, %139 : vector<1x512xf32>
    %141 = arith.addf %137, %140 : vector<1x512xf32>
    %cst_63 = arith.constant 0.000000e+00 : f32
    %142 = vector.broadcast %cst_63 : f32 to vector<1x512xf32>
    %143 = arith.maximumf %141, %142 : vector<1x512xf32>
    %c6_64 = arith.constant 6 : index
    %144 = memref.load %arg4[%c6_64] : memref<8xf32, #tpu.memory_space<smem>>
    %145 = vector.broadcast %144 : f32 to vector<1x512xf32>
    %146 = arith.mulf %143, %145 : vector<1x512xf32>
    %147 = arith.addf %127, %146 : vector<1x512xf32>
    %c0_65 = arith.constant 0 : index
    %c7 = arith.constant 7 : index
    %148 = memref.load %arg2[%c0_65, %c7] : memref<3x8xf32, #tpu.memory_space<smem>>
    %149 = vector.broadcast %148 : f32 to vector<1x512xf32>
    %150 = arith.mulf %1, %149 : vector<1x512xf32>
    %c7_66 = arith.constant 7 : index
    %151 = memref.load %arg3[%c7_66] : memref<8xf32, #tpu.memory_space<smem>>
    %152 = vector.broadcast %151 : f32 to vector<1x512xf32>
    %153 = arith.addf %150, %152 : vector<1x512xf32>
    %c1_67 = arith.constant 1 : index
    %c7_68 = arith.constant 7 : index
    %154 = memref.load %arg2[%c1_67, %c7_68] : memref<3x8xf32, #tpu.memory_space<smem>>
    %155 = vector.broadcast %154 : f32 to vector<1x512xf32>
    %156 = arith.mulf %3, %155 : vector<1x512xf32>
    %157 = arith.addf %153, %156 : vector<1x512xf32>
    %c2_69 = arith.constant 2 : index
    %c7_70 = arith.constant 7 : index
    %158 = memref.load %arg2[%c2_69, %c7_70] : memref<3x8xf32, #tpu.memory_space<smem>>
    %159 = vector.broadcast %158 : f32 to vector<1x512xf32>
    %160 = arith.mulf %5, %159 : vector<1x512xf32>
    %161 = arith.addf %157, %160 : vector<1x512xf32>
    %cst_71 = arith.constant 0.000000e+00 : f32
    %162 = vector.broadcast %cst_71 : f32 to vector<1x512xf32>
    %163 = arith.maximumf %161, %162 : vector<1x512xf32>
    %c7_72 = arith.constant 7 : index
    %164 = memref.load %arg4[%c7_72] : memref<8xf32, #tpu.memory_space<smem>>
    %165 = vector.broadcast %164 : f32 to vector<1x512xf32>
    %166 = arith.mulf %163, %165 : vector<1x512xf32>
    %167 = arith.addf %147, %166 : vector<1x512xf32>
    %c0_73 = arith.constant 0 : index
    %c0_74 = arith.constant 0 : index
    %168 = vector.load %arg6[%c0_73, %c0_74] : memref<1x512xf32, #tpu.memory_space<vmem>>, vector<1x512xf32>
    tpu.vector_store %arg6[%c0_73, %c0_74], %167 {strides = array<i32>} : memref<1x512xf32, #tpu.memory_space<vmem>>, vector<1x512xf32>,
    return
  }
  func.func @transform_0(%arg0: i32) -> (i32, i32, i32) {
    %c0_i32 = arith.constant 0 : i32
    %c0_i32_0 = arith.constant 0 : i32
    %c0_i32_1 = arith.constant 0 : i32
    return %c0_i32, %arg0, %c0_i32_0 : i32, i32, i32
  }
  func.func @transform_1(%arg0: i32) -> (i32, i32) {
    %c0_i32 = arith.constant 0 : i32
    %c0_i32_0 = arith.constant 0 : i32
    %c0_i32_1 = arith.constant 0 : i32
    return %c0_i32, %c0_i32_0 : i32, i32
  }
  func.func @transform_2(%arg0: i32) -> i32 {
    %c0_i32 = arith.constant 0 : i32
    %c0_i32_0 = arith.constant 0 : i32
    return %c0_i32 : i32
  }
  func.func @transform_3(%arg0: i32) -> i32 {
    %c0_i32 = arith.constant 0 : i32
    %c0_i32_0 = arith.constant 0 : i32
    return %c0_i32 : i32
  }
  func.func @transform_4(%arg0: i32) -> i32 {
    %c0_i32 = arith.constant 0 : i32
    %c0_i32_0 = arith.constant 0 : i32
    return %c0_i32 : i32
  }
  func.func @transform_5(%arg0: i32) -> (i32, i32) {
    %c0_i32 = arith.constant 0 : i32
    %c0_i32_0 = arith.constant 0 : i32
    return %arg0, %c0_i32 : i32, i32
  }
}

</mosaic_0001>

<bundles_post_ra>
// kernel: tpu_custom_call.1
= control target key start
LH: loop header
LB: loop body
LE: loop exit
PB: predicated region body
PF: predicated region fallthrough
CT: control target
= control target key end

     0   :  { %11 = vsyncpa [#allocation4], 0  ;;  %s503_s0 = inlined_call_operand.hbm [shape: f32[3,1,512], index: 0, kind: input, shape index: {}]   ;;  %s504_s1 = inlined_call_operand.hbm [shape: f32[3,8], index: 1, kind: input, shape index: {}]   ;;  %s505_s2 = inlined_call_operand.vmem [shape: f32[8], index: 2, kind: input, shape index: {}]   ;;  %s506_s3 = inlined_call_operand.vmem [shape: f32[8], index: 3, kind: input, shape index: {}]   ;;  %s507_s4 = inlined_call_operand.<no memory space> [shape: f32[1], index: 4, kind: input, shape index: {}]   ;;  %s508_s5 = inlined_call_operand.hbm [shape: f32[1,512], index: 5, kind: output, shape index: {}]  }
   0x1   :  { %12 = vsyncpa [#allocation6], 0 }
   0x2   :  { %13 = vsyncpa [#allocation7], 0 }
   0x3   :  { %14 = vsyncpa [#allocation11], 0 }
   0x4   :  { %15 = vsyncpa [#allocation5], 0  ;;  %s20_s20 = sshll.u32 %s503_s0, 4  ;;  %s397_s21 = smov [#allocation3]   ;;  %s21_s20 = int_to_ptr.hbm [resolvable:$true] %s20_s20 }
   0x5   :  { %s22_s22 = sshll.u32 %s397_s21, 4  ;;  %s34_s25 = sshll.u32 %s504_s1, 4  ;;  %s23_s22 = int_to_ptr.vmem [resolvable:$true] %s22_s22  ;;  %s35_s25 = int_to_ptr.hbm [resolvable:$true] %s34_s25 }
   0x6   :  { %s398_s26 = smov 64   ;;  %s399_s27 = smov 4  }
   0x7   :  { %28 = dma.hbm_to_vmem [thread:$0]  %s21_s20, 192, %s23_s22, [#allocation4], %s398_s26, %s398_s26, %s399_s27  }
   0x8   :  { %s400_s28 = smov [#allocation8]   ;;  %s43_s6 = sshll.u32 %s505_s2, 4  ;;  %s44_s6 = int_to_ptr.vmem [resolvable:$true] %s43_s6 }
   0x9   :  { %37 = dma.hbm_to_smem %s35_s25, 64, %s400_s28, [#allocation6]  }
   0xa   :  { %s52_s8 = sshll.u32 %s506_s3, 4  ;;  %s401_s9 = smov [#allocation9]   ;;  %s53_s8 = int_to_ptr.vmem [resolvable:$true] %s52_s8 }
   0xb   :  { %46 = dma.vmem_to_smem %s44_s6, 16, %s401_s9, [#allocation7]  }
   0xc   :  { %s402_s10 = smov [#allocation10]  }
   0xd   :  { %55 = dma.vmem_to_smem %s53_s8, 16, %s402_s10, [#allocation11]  }
   0xe   :  { %387 = dma.done.wait [#allocation4], 192  }
   0xf   :  { %388 = vsyncadd [#allocation4], 4294967104 }
  0x10   :  { %389 = dma.done.wait [#allocation6], 64  }
  0x11   :  { %390 = vsyncadd [#allocation6], 4294967232 }
  0x12   :  { %391 = dma.done.wait [#allocation7], 16  }
  0x13   :  { %392 = vsyncadd [#allocation7], 4294967280 }
  0x14   :  { %393 = dma.done.wait [#allocation11], 16  }
  0x15   :  { %394 = vsyncadd [#allocation11], 4294967280 }
  0x16   :  { %74 = sfence }
  0x17   :  { %s82_s1 = sld [smem:[#allocation8]]  ;;  %v446_v0 = vld [vmem:[#allocation3] sm:$0xf]  ;;  %v450_v1 = vld [vmem:[#allocation3 + $0x4] sm:$0xf]  ;;  %v81_v33 = vstv %s507_s4 }
  0x18   :  { %s85_s2 = sld [smem:[#allocation9]]  ;;  %v452_v3 = vld [vmem:[#allocation3 + $0x8] sm:$0xf] }
  0x19   :  { %s259_s11 = sld [smem:[#allocation8 + $0x80]] }
  0x1a   :  { %s260_s12 = sld [smem:[#allocation8 + $0x100]] }
  0x1b   :  { %s448_s3 = sld [smem:[#allocation10]] }
  0x1c   :  { %s261_s13 = sld [smem:[#allocation8 + $0x1]] }
  0x1d   :  { %v83_v2 = vstv %s82_s1  ;;  %s262_s14 = sld [smem:[#allocation9 + $0x1]] }
  0x1e   :  { %v84_v4 = vmul.f32 %v83_v2, %v446_v0  ;;  %v86_v5 = vstv %s85_s2  ;;  %s263_s15 = sld [smem:[#allocation8 + $0x81]] }
  0x1f   :  { %v89_v6 = vstv %s259_s11  ;;  %s264_s16 = sld [smem:[#allocation8 + $0x101]] }
  0x20   :  { %v87_v7 = vadd.f32 %v86_v5, %v84_v4  ;;  %v90_v8 = vmul.f32 %v89_v6, %v450_v1  ;;  %v93_v9 = vstv %s260_s12  ;;  %s456_s17 = sld [smem:[#allocation10 + $0x1]] }
  0x21   :  { %v94_v10 = vmul.f32 %v93_v9, %v452_v3  ;;  %s266_s18 = sld [smem:[#allocation8 + $0x2]]  ;;  %v98_v22 = vstv %s448_s3 }
  0x22   :  { %v91_v11 = vadd.f32 %v90_v8, %v87_v7  ;;  %v102_v12 = vstv %s261_s13  ;;  %s267_s19 = sld [smem:[#allocation9 + $0x2]] }
  0x23   :  { %v103_v13 = vmul.f32 %v102_v12, %v446_v0  ;;  %v105_v14 = vstv %s262_s14  ;;  %s268_s20 = sld [smem:[#allocation8 + $0x82]] }
  0x24   :  { %v95_v15 = vadd.f32 %v94_v10, %v91_v11  ;;  %v108_v16 = vstv %s263_s15  ;;  %s269_s21 = sld [smem:[#allocation8 + $0x102]] }
  0x25   :  { %v106_v17 = vadd.f32 %v105_v14, %v103_v13  ;;  %v109_v18 = vmul.f32 %v108_v16, %v450_v1  ;;  %v112_v19 = vstv %s264_s16  ;;  %s461_s22 = sld [smem:[#allocation10 + $0x2]] }
  0x26   :  { %v96_v20 = vmax.f32 %v95_v15, 0.0  ;;  %v113_v21 = vmul.f32 %v112_v19, %v452_v3  ;;  %s271_s23 = sld [smem:[#allocation8 + $0x3]]  ;;  %v117_v36 = vstv %s456_s17 }
  0x27   :  { %v110_v23 = vadd.f32 %v109_v18, %v106_v17  ;;  %v121_v24 = vstv %s266_s18  ;;  %s272_s24 = sld [smem:[#allocation9 + $0x3]] }
  0x28   :  { %v122_v25 = vmul.f32 %v121_v24, %v446_v0  ;;  %v124_v26 = vstv %s267_s19  ;;  %s273_s25 = sld [smem:[#allocation8 + $0x83]]  ;;  %v99_v29 = vmul.f32 %v98_v22, %v96_v20 }
  0x29   :  { %v114_v27 = vadd.f32 %v113_v21, %v110_v23  ;;  %v127_v28 = vstv %s268_s20  ;;  %s274_s26 = sld [smem:[#allocation8 + $0x103]]  ;;  %s403_s20 = smov [#allocation12]  }
  0x2a   :  { %v125_v30 = vadd.f32 %v124_v26, %v122_v25  ;;  %v128_v31 = vmul.f32 %v127_v28, %v450_v1  ;;  %v131_v32 = vstv %s269_s21  ;;  %s467_s27 = sld [smem:[#allocation10 + $0x3]]  ;;  %v100_v41 = vadd.f32 %v99_v29, %v81_v33  ;;  %s244_s21 = sshll.u32 %s403_s20, 4  ;;  %s245_s21 = int_to_ptr.vmem [resolvable:$true] %s244_s21 }
  0x2b   :  { %v115_v34 = vmax.f32 %v114_v27, 0.0  ;;  %v132_v35 = vmul.f32 %v131_v32, %v452_v3  ;;  %s276_s30 = sld [smem:[#allocation8 + $0x4]]  ;;  %v136_v50 = vstv %s461_s22 }
  0x2c   :  { %v129_v37 = vadd.f32 %v128_v31, %v125_v30  ;;  %v140_v38 = vstv %s271_s23  ;;  %s277_s6 = sld [smem:[#allocation9 + $0x4]] }
  0x2d   :  { %v141_v39 = vmul.f32 %v140_v38, %v446_v0  ;;  %v143_v40 = vstv %s272_s24  ;;  %s278_s0 = sld [smem:[#allocation8 + $0x84]]  ;;  %v118_v44 = vmul.f32 %v117_v36, %v115_v34  ;;  %s246_s24 = sshll.u32 %s508_s5, 4  ;;  %s247_s24 = int_to_ptr.hbm [resolvable:$true] %s246_s24 }
  0x2e   :  { %v133_v42 = vadd.f32 %v132_v35, %v129_v37  ;;  %v146_v43 = vstv %s273_s25  ;;  %s279_s7 = sld [smem:[#allocation8 + $0x104]] }
  0x2f   :  { %v144_v45 = vadd.f32 %v143_v40, %v141_v39  ;;  %v147_v46 = vmul.f32 %v146_v43, %v450_v1  ;;  %v150_v47 = vstv %s274_s26  ;;  %s476_s4 = sld [smem:[#allocation10 + $0x4]]  ;;  %v119_v55 = vadd.f32 %v118_v44, %v100_v41 }
  0x30   :  { %v134_v48 = vmax.f32 %v133_v42, 0.0  ;;  %v151_v49 = vmul.f32 %v150_v47, %v452_v3  ;;  %s281_s8 = sld [smem:[#allocation8 + $0x5]]  ;;  %v155_v2 = vstv %s467_s27 }
  0x31   :  { %v148_v51 = vadd.f32 %v147_v46, %v144_v45  ;;  %v159_v52 = vstv %s276_s30  ;;  %s282_s9 = sld [smem:[#allocation9 + $0x5]] }
  0x32   :  { %v160_v53 = vmul.f32 %v159_v52, %v446_v0  ;;  %v162_v54 = vstv %s277_s6  ;;  %s283_s10 = sld [smem:[#allocation8 + $0x85]]  ;;  %v137_v58 = vmul.f32 %v136_v50, %v134_v48 }
  0x33   :  { %v152_v56 = vadd.f32 %v151_v49, %v148_v51  ;;  %v165_v57 = vstv %s278_s0  ;;  %s284_s1 = sld [smem:[#allocation8 + $0x105]]  ;;  %v234_v51 = vlaneseq }
  0x34   :  { %v163_v59 = vadd.f32 %v162_v54, %v160_v53  ;;  %v166_v60 = vmul.f32 %v165_v57, %v450_v1  ;;  %v169_v61 = vstv %s279_s7  ;;  %s482_s2 = sld [smem:[#allocation10 + $0x5]]  ;;  %v138_v8 = vadd.f32 %v137_v58, %v119_v55 }
  0x35   :  { %v153_v62 = vmax.f32 %v152_v56, 0.0  ;;  %v170_v63 = vmul.f32 %v169_v61, %v452_v3  ;;  %s286_s11 = sld [smem:[#allocation8 + $0x6]]  ;;  %v174_v16 = vstv %s476_s4  ;;  %vm236_vm0 = vcmp.lt.s32.totalorder %v234_v51, 512 }
  0x36   :  { %v167_v4 = vadd.f32 %v166_v60, %v163_v59  ;;  %v178_v5 = vstv %s281_s8  ;;  %s287_s12 = sld [smem:[#allocation9 + $0x6]] }
  0x37   :  { %v179_v6 = vmul.f32 %v178_v5, %v446_v0  ;;  %v181_v7 = vstv %s282_s9  ;;  %s288_s3 = sld [smem:[#allocation8 + $0x86]]  ;;  %v156_v11 = vmul.f32 %v155_v2, %v153_v62 }
  0x38   :  { %v171_v9 = vadd.f32 %v170_v63, %v167_v4  ;;  %v184_v10 = vstv %s283_s10  ;;  %s289_s13 = sld [smem:[#allocation8 + $0x106]] }
  0x39   :  { %v182_v12 = vadd.f32 %v181_v7, %v179_v6  ;;  %v185_v13 = vmul.f32 %v184_v10, %v450_v1  ;;  %v188_v14 = vstv %s284_s1  ;;  %s488_s14 = sld [smem:[#allocation10 + $0x6]]  ;;  %v157_v22 = vadd.f32 %v156_v11, %v138_v8 }
  0x3a   :  { %v172_v15 = vmax.f32 %v171_v9, 0.0  ;;  %v189_v17 = vmul.f32 %v188_v14, %v452_v3  ;;  %s291_s15 = sld [smem:[#allocation8 + $0x7]]  ;;  %v193_v26 = vstv %s482_s2 }
  0x3b   :  { %v186_v18 = vadd.f32 %v185_v13, %v182_v12  ;;  %v197_v19 = vstv %s286_s11  ;;  %s292_s16 = sld [smem:[#allocation9 + $0x7]] }
  0x3c   :  { %v198_v20 = vmul.f32 %v197_v19, %v446_v0  ;;  %v200_v21 = vstv %s287_s12  ;;  %s293_s17 = sld [smem:[#allocation8 + $0x87]]  ;;  %v175_v23 = vmul.f32 %v174_v16, %v172_v15 }
  0x3d   :  { %v190_v24 = vadd.f32 %v189_v17, %v186_v18  ;;  %v203_v25 = vstv %s288_s3  ;;  %s294_s18 = sld [smem:[#allocation8 + $0x107]] }
  0x3e   :  { %v201_v27 = vadd.f32 %v200_v21, %v198_v20  ;;  %v204_v28 = vmul.f32 %v203_v25, %v450_v1  ;;  %v207_v29 = vstv %s289_s13  ;;  %s295_s19 = sld [smem:[#allocation10 + $0x7]]  ;;  %v176_v34 = vadd.f32 %v175_v23, %v157_v22 }
  0x3f   :  { %v191_v30 = vmax.f32 %v190_v24, 0.0  ;;  %v208_v31 = vmul.f32 %v207_v29, %v452_v3  ;;  %v212_v40 = vstv %s488_s14 }
  0x40   :  { %v205_v32 = vadd.f32 %v204_v28, %v201_v27  ;;  %v216_v33 = vstv %s291_s15 }
  0x41   :  { %v194_v35 = vmul.f32 %v193_v26, %v191_v30  ;;  %v217_v36 = vmul.f32 %v216_v33, %v446_v0  ;;  %v219_v37 = vstv %s292_s16 }
  0x42   :  { %v209_v38 = vadd.f32 %v208_v31, %v205_v32  ;;  %v222_v39 = vstv %s293_s17 }
  0x43   :  { %v220_v41 = vadd.f32 %v219_v37, %v217_v36  ;;  %v223_v42 = vmul.f32 %v222_v39, %v450_v1  ;;  %v226_v43 = vstv %s294_s18  ;;  %v195_v46 = vadd.f32 %v194_v35, %v176_v34 }
  0x44   :  { %v210_v44 = vmax.f32 %v209_v38, 0.0  ;;  %v227_v45 = vmul.f32 %v226_v43, %v452_v3  ;;  %v231_v50 = vstv %s295_s19 }
  0x45   :  { %v224_v47 = vadd.f32 %v223_v42, %v220_v41 }
  0x46   :  { %v213_v48 = vmul.f32 %v212_v40, %v210_v44 }
  0x47   :  { %v228_v49 = vadd.f32 %v227_v45, %v224_v47 }
  0x48   :  { %v214_v52 = vadd.f32 %v213_v48, %v195_v46 }
  0x49   :  { %v229_v53 = vmax.f32 %v228_v49, 0.0 }
  0x4b   :  { %v232_v0 = vmul.f32 %v231_v50, %v229_v53 }
  0x4d   :  { %v233_v1 = vadd.f32 %v232_v0, %v214_v52 }
  0x4f   :  { %238 = vst.msk [vmem:[#allocation12] sm:$0xf] %vm236_vm0, %v233_v1 }
  0x50   :  { %249 = dma.vmem_to_hbm [thread:$0]  %s245_s21, 64, %s247_s24, [#allocation5]  }
  0x51   :  { %395 = dma.done.wait [#allocation5], 64  }
  0x52   :  { %396 = vsyncadd [#allocation5], 4294967232 }
  0x53   :  { %254 = vsyncpa [#allocation4], 1 }
  0x54   :  { %255 = vsyncpa [#allocation5], 1 }
  0x55   :  { %256 = vsyncpa [#allocation6], 1 }
  0x56   :  { %257 = vsyncpa [#allocation7], 1 }
  0x57   :  { %258 = vsyncpa [#allocation11], 1 }

</bundles_post_ra>
